<compile_context>
chip_gen: v6e
topology: v6e:2x2x1
jax: 0.10.0
libtpu: 0.0.40
codegen_flags: <defaults>
</compile_context>

<pallas_src>
import functools

import jax
import jax.numpy as jnp
from jax import lax
from jax.experimental import pallas as pl
from jax.experimental.pallas import tpu as pltpu

HIDDEN = 32            # H
INPUT_SIZE = 1
GATES = 4 * HIDDEN     # 128 -> the gates tile is exactly one lane-width (vreg dense)


def lstm_kernel(x_ref, wih_ref, whh_ref, b_ref, wfc_ref, bfc_ref,
                out_ref, h_scr, c_scr, *, tail, unroll):
    """One grid step = one (batch tile, time chunk).

    x_ref   : (Tc, Bt, 1)   time-major input chunk            (f32)
    wih_ref : (1, 4H)       weight_ih_l0.T                    (f32)
    whh_ref : (H, 4H)       weight_hh_l0.T                    (bf16 MXU operand)
    b_ref   : (1, 4H)       bias_ih_l0 + bias_hh_l0           (f32)
    wfc_ref : (1, H)        fc.weight                         (f32)
    bfc_ref : (1, 1)        fc.bias                           (f32)
    out_ref : (Bt, 1)
    h_scr, c_scr : (Bt, H)  f32 recurrent state, persistent across time chunks
    tail    : static number of valid steps in the final chunk (1..Tc)
    unroll  : fori_loop unroll factor (static)
    """
    H = HIDDEN
    Tc = x_ref.shape[0]
    Bt = h_scr.shape[0]
    t_chunk = pl.program_id(1)
    n_chunks = pl.num_programs(1)

    @pl.when(t_chunk == 0)
    def _init():
        h_scr[...] = jnp.zeros_like(h_scr)
        c_scr[...] = jnp.zeros_like(c_scr)

    # Loop-invariant operands hoisted out of the recurrence (loaded once per chunk).
    wih = wih_ref[...]          # (1, 4H)
    bias = b_ref[...]           # (1, 4H)
    whh = whh_ref[...]          # (H, 4H) bf16
    # Lane mask selecting the g gate (lanes 2H..3H-1) out of the dense 128-lane
    # activation tile: one sigmoid + one tanh over all lanes, then a select.
    lane = lax.broadcasted_iota(jnp.int32, (Bt, GATES), 1)
    g_lane = jnp.logical_and(lane >= 2 * H, lane < 3 * H)

    def run_steps(n_steps):
        # h/c live in registers for the whole chunk; VMEM scratch is only touched
        # at chunk entry/exit for cross-chunk persistence.
        def step(t, carry):
            h, c = carry
            # Input projection + bias on the fly: independent of h/c, so it sits
            # off the serial critical path and overlaps the recurrent MXU latency.
            pg = x_ref[t] * wih + bias                       # (Bt,1)*(1,4H)+(1,4H)
            # Recurrent matmul: bf16 operands -> single MXU pass, f32 accumulate.
            # TODO(synk): pltpu.matmul_push_rhs/acc_lhs/pop could hold W_hh
            # resident across steps; kept as jnp.dot for portability.
            gates = pg + jnp.dot(h.astype(jnp.bfloat16), whh,
                                 preferred_element_type=jnp.float32)   # (Bt, 4H)
            act = jnp.where(g_lane, jnp.tanh(gates), jax.nn.sigmoid(gates))
            i_g = act[:, 0 * H:1 * H]
            f_g = act[:, 1 * H:2 * H]
            g_g = act[:, 2 * H:3 * H]
            o_g = act[:, 3 * H:4 * H]
            c_new = f_g * c + i_g * g_g
            h_new = o_g * jnp.tanh(c_new)
            return h_new, c_new

        h_n, c_n = lax.fori_loop(0, n_steps, step, (h_scr[...], c_scr[...]),
                                 unroll=unroll)
        h_scr[...] = h_n
        c_scr[...] = c_n

    if tail == Tc:
        run_steps(Tc)
    else:
        # Non-divisible T: every chunk but the last runs Tc steps; the last runs
        # the static `tail` steps (x was zero-padded in the wrapper but the
        # padded region is never read).
        @pl.when(t_chunk < n_chunks - 1)
        def _full_chunk():
            run_steps(Tc)

        @pl.when(t_chunk == n_chunks - 1)
        def _tail_chunk():
            run_steps(tail)

    @pl.when(t_chunk == n_chunks - 1)
    def _finalize():
        # fc(out[:, -1, :]) as a VPU multiply + lane reduction: a (Bt,32)@(32,1)
        # MXU pass with a 1-lane result would be all latency for 32 MACs.
        out_ref[...] = (jnp.sum(h_scr[...] * wfc_ref[...], axis=-1, keepdims=True)
                        + bfc_ref[...])


def _tensorcores_per_chip():
    """Best-effort TensorCore count (v7x has 2 per chip; v5e/v6e have 1)."""
    try:
        kind = jax.devices()[0].device_kind.lower()
    except Exception:
        return 1
    return 2 if "v7" in kind else 1


def lstm_model_forward(x, params):
    """x: (B, T, 1) float32 -> (B, 1) float32."""
    w_ih, w_hh, b_ih, b_hh, w_fc, b_fc = params
    B, T, Din = x.shape
    assert Din == INPUT_SIZE
    H = HIDDEN

    x_tbd = jnp.transpose(x, (1, 0, 2)).astype(jnp.float32)      # (T, B, 1) time-major
    wih = w_ih.reshape(1, 4 * H).astype(jnp.float32)             # (1, 4H)
    whh = w_hh.T.astype(jnp.bfloat16)                            # (H, 4H) bf16 MXU operand
    bias = (b_ih + b_hh).reshape(1, 4 * H).astype(jnp.float32)   # (1, 4H)
    wfc = w_fc.reshape(1, H).astype(jnp.float32)                 # (1, H)
    bfc = b_fc.reshape(1, 1).astype(jnp.float32)                 # (1, 1)

    # Batch tiling: the "parallel" batch axis only pays when there are really two
    # TensorCores to shard it onto (v7x) AND each half still has several (8,128)
    # rows of per-step work; on 1-TC v5e/v6e a split just runs the serial
    # recurrence twice.
    if _tensorcores_per_chip() >= 2 and B >= 64 and B % 16 == 0:
        Bt = B // 2
    else:
        Bt = B
    nb = B // Bt

    # Time chunking: ceiling-divide with a zero-padded, static-length tail so
    # awkward T never collapses to per-step grid iterations. With pre-gates
    # computed on the fly, the x chunk is the only per-chunk VMEM consumer; cap
    # it at ~2 MiB per pipeline buffer.
    max_tc_vmem = max(8, (2 * 1024 * 1024) // (Bt * 4))
    Tc = max(1, min(T, 1024, max_tc_vmem))
    nt = pl.cdiv(T, Tc)
    tail = T - (nt - 1) * Tc
    T_pad = nt * Tc
    if T_pad != T:
        x_tbd = jnp.pad(x_tbd, ((0, T_pad - T), (0, 0), (0, 0)))

    # Unroll the serial recurrence so the LLO scheduler can overlap adjacent
    # steps' bookkeeping/MXU pops; scale down with Bt to avoid vreg spills.
    if Tc <= 16:
        unroll = True
    elif Bt <= 32:
        unroll = 8
    elif Bt <= 64:
        unroll = 4
    else:
        unroll = 2

    kernel = functools.partial(lstm_kernel, tail=tail, unroll=unroll)

    out = pl.pallas_call(
        kernel,
        out_shape=jax.ShapeDtypeStruct((B, 1), jnp.float32),
        grid=(nb, nt),
        in_specs=[
            pl.BlockSpec((Tc, Bt, 1), lambda b, t: (t, b, 0)),   # x chunk
            pl.BlockSpec((1, 4 * H), lambda b, t: (0, 0)),       # wih
            pl.BlockSpec((H, 4 * H), lambda b, t: (0, 0)),       # whh (bf16)
            pl.BlockSpec((1, 4 * H), lambda b, t: (0, 0)),       # fused bias
            pl.BlockSpec((1, H), lambda b, t: (0, 0)),           # fc weight row
            pl.BlockSpec((1, 1), lambda b, t: (0, 0)),           # fc bias
        ],
        out_specs=pl.BlockSpec((Bt, 1), lambda b, t: (b, 0)),
        scratch_shapes=[
            pltpu.VMEM((Bt, H), jnp.float32),            # h state (cross-chunk)
            pltpu.VMEM((Bt, H), jnp.float32),            # c state (cross-chunk)
        ],
        compiler_params=pltpu.CompilerParams(
            dimension_semantics=("parallel", "arbitrary")),
    )(x_tbd, wih, whh, bias, wfc, bfc)
    return out


def lstm_model_ref(x, params):
    """Pure-JAX f32 reference matching torch.nn.LSTM + Linear semantics."""
    w_ih, w_hh, b_ih, b_hh, w_fc, b_fc = params
    B, T, _ = x.shape
    H = HIDDEN
    hp = lax.Precision.HIGHEST
    h = jnp.zeros((B, H), jnp.float32)
    c = jnp.zeros((B, H), jnp.float32)
    for t in range(T):
        gates = (jnp.dot(x[:, t, :], w_ih.T, precision=hp)
                 + jnp.dot(h, w_hh.T, precision=hp) + b_ih + b_hh)
        i = jax.nn.sigmoid(gates[:, 0 * H:1 * H])
        f = jax.nn.sigmoid(gates[:, 1 * H:2 * H])
        g = jnp.tanh(gates[:, 2 * H:3 * H])
        o = jax.nn.sigmoid(gates[:, 3 * H:4 * H])
        c = f * c + i * g
        h = o * jnp.tanh(c)
    return jnp.dot(h, w_fc.T, precision=hp) + b_fc


def init_params(key):
    """Deterministic init mimicking PyTorch's U(-1/sqrt(H), 1/sqrt(H))."""
    H = HIDDEN
    bound = 1.0 / jnp.sqrt(jnp.float32(H))
    ks = jax.random.split(key, 6)
    u = lambda k, shape: jax.random.uniform(k, shape, jnp.float32, -bound, bound)
    w_ih = u(ks[0], (4 * H, INPUT_SIZE))   # weight_ih_l0
    w_hh = u(ks[1], (4 * H, H))            # weight_hh_l0
    b_ih = u(ks[2], (4 * H,))              # bias_ih_l0
    b_hh = u(ks[3], (4 * H,))              # bias_hh_l0
    w_fc = u(ks[4], (1, H))                # fc.weight
    b_fc = u(ks[5], (1,))                  # fc.bias
    return (w_ih, w_hh, b_ih, b_hh, w_fc, b_fc)


if __name__ == "__main__":
    key = jax.random.PRNGKey(0)
    kp, kx = jax.random.split(key)
    params = init_params(kp)

    B, T = 2, 8
    x = jax.random.normal(kx, (B, T, INPUT_SIZE), jnp.float32)

    out = jax.block_until_ready(lstm_model_forward(x, params))
    ref = lstm_model_ref(x, params)

    assert out.shape == (B, 1)
    # Recurrence matmul uses bf16 MXU operands (f32 accumulate); tolerance sized
    # for that (observed ~1e-4 at T=8 vs. the f32 reference). For very long T,
    # bf16 state drift should be re-validated against the f32 reference.
    assert jnp.allclose(out, ref, atol=5e-3, rtol=5e-3), (out, ref)
    print("KERNEL_OK")
</pallas_src>

<mosaic_0001>
module attributes {stable_mosaic.version = 11 : i64} {
  func.func @lstm_kernel(%arg0: i32, %arg1: i32, %arg2: memref<8x2x1xf32, #tpu.memory_space<vmem>>, %arg3: memref<1x128xf32, #tpu.memory_space<vmem>>, %arg4: memref<32x128xbf16, #tpu.memory_space<vmem>>, %arg5: memref<1x128xf32, #tpu.memory_space<vmem>>, %arg6: memref<1x32xf32, #tpu.memory_space<vmem>>, %arg7: memref<1x1xf32, #tpu.memory_space<vmem>>, %arg8: memref<2x1xf32, #tpu.memory_space<vmem>>, %arg9: memref<2x32xf32, #tpu.memory_space<vmem>>, %arg10: memref<2x32xf32, #tpu.memory_space<vmem>>) attributes {dimension_semantics = [#tpu.dimension_semantics<parallel>, #tpu.dimension_semantics<arbitrary>], iteration_bounds = array<i64: 1, 1>, scalar_prefetch = 0 : i64, scratch_operands = 2 : i64, tpu.core_type = #tpu.core_type<tc>, window_params = [{transform_indices = @transform_0, window_bounds = array<i64: 8, 2, 1>}, {pipeline_mode = #tpu.pipeline_mode<synchronous>, transform_indices = @transform_1, window_bounds = array<i64: 1, 128>}, {pipeline_mode = #tpu.pipeline_mode<synchronous>, transform_indices = @transform_2, window_bounds = array<i64: 32, 128>}, {pipeline_mode = #tpu.pipeline_mode<synchronous>, transform_indices = @transform_3, window_bounds = array<i64: 1, 128>}, {pipeline_mode = #tpu.pipeline_mode<synchronous>, transform_indices = @transform_4, window_bounds = array<i64: 1, 32>}, {pipeline_mode = #tpu.pipeline_mode<synchronous>, transform_indices = @transform_5, window_bounds = array<i64: 1, 1>}, {transform_indices = @transform_6, window_bounds = array<i64: 2, 1>}]} {
    %c0_i32 = arith.constant 0 : i32
    %0 = arith.cmpi eq, %arg1, %c0_i32 : i32
    %1 = arith.extui %0 : i1 to i32
    %c0_i32_0 = arith.constant 0 : i32
    %2 = arith.cmpi ne, %1, %c0_i32_0 : i32
    scf.if %2 {
      %cst_48 = arith.constant 0.000000e+00 : f32
      %235 = vector.broadcast %cst_48 : f32 to vector<2x32xf32>
      %c0_49 = arith.constant 0 : index
      %c0_50 = arith.constant 0 : index
      %236 = vector.load %arg9[%c0_49, %c0_50] : memref<2x32xf32, #tpu.memory_space<vmem>>, vector<2x32xf32>
      tpu.vector_store %arg9[%c0_49, %c0_50], %235 {strides = array<i32>} : memref<2x32xf32, #tpu.memory_space<vmem>>, vector<2x32xf32>,
      %cst_51 = arith.constant 0.000000e+00 : f32
      %237 = vector.broadcast %cst_51 : f32 to vector<2x32xf32>
      %c0_52 = arith.constant 0 : index
      %c0_53 = arith.constant 0 : index
      %238 = vector.load %arg10[%c0_52, %c0_53] : memref<2x32xf32, #tpu.memory_space<vmem>>, vector<2x32xf32>
      tpu.vector_store %arg10[%c0_52, %c0_53], %237 {strides = array<i32>} : memref<2x32xf32, #tpu.memory_space<vmem>>, vector<2x32xf32>,
    } else {
    }
    %c0 = arith.constant 0 : index
    %c0_1 = arith.constant 0 : index
    %3 = vector.load %arg3[%c0, %c0_1] : memref<1x128xf32, #tpu.memory_space<vmem>>, vector<1x128xf32>
    %c0_2 = arith.constant 0 : index
    %c0_3 = arith.constant 0 : index
    %4 = vector.load %arg5[%c0_2, %c0_3] : memref<1x128xf32, #tpu.memory_space<vmem>>, vector<1x128xf32>
    %c0_4 = arith.constant 0 : index
    %c0_5 = arith.constant 0 : index
    %5 = vector.load %arg4[%c0_4, %c0_5] : memref<32x128xbf16, #tpu.memory_space<vmem>>, vector<32x128xbf16>
    %6 = tpu.iota {dimensions = array<i32: 1>} : vector<2x128xi32>
    %c64_i32 = arith.constant 64 : i32
    %7 = vector.broadcast %c64_i32 : i32 to vector<2x128xi32>
    %8 = arith.cmpi sge, %6, %7 : vector<2x128xi32>
    %c96_i32 = arith.constant 96 : i32
    %9 = vector.broadcast %c96_i32 : i32 to vector<2x128xi32>
    %10 = arith.cmpi slt, %6, %9 : vector<2x128xi32>
    %11 = arith.andi %8, %10 : vector<2x128xi1>
    %c0_6 = arith.constant 0 : index
    %c0_7 = arith.constant 0 : index
    %12 = vector.load %arg9[%c0_6, %c0_7] : memref<2x32xf32, #tpu.memory_space<vmem>>, vector<2x32xf32>
    %c0_8 = arith.constant 0 : index
    %c0_9 = arith.constant 0 : index
    %13 = vector.load %arg10[%c0_8, %c0_9] : memref<2x32xf32, #tpu.memory_space<vmem>>, vector<2x32xf32>
    %c0_i32_10 = arith.constant 0 : i32
    %14 = arith.index_cast %c0_i32_10 : i32 to index
    %c0_11 = arith.constant 0 : index
    %c0_12 = arith.constant 0 : index
    %15 = vector.load %arg2[%14, %c0_11, %c0_12] : memref<8x2x1xf32, #tpu.memory_space<vmem>>, vector<1x2x1xf32>
    %16 = vector.shape_cast %15 : vector<1x2x1xf32> to vector<2x1xf32>
    %17 = vector.broadcast %16 : vector<2x1xf32> to vector<2x128xf32>
    %18 = vector.broadcast %3 : vector<1x128xf32> to vector<2x128xf32>
    %19 = arith.mulf %17, %18 : vector<2x128xf32>
    %20 = vector.broadcast %4 : vector<1x128xf32> to vector<2x128xf32>
    %21 = arith.addf %19, %20 : vector<2x128xf32>
    %22 = arith.truncf %12 : vector<2x32xf32> to vector<2x32xbf16>
    %cst = arith.constant dense<0.000000e+00> : vector<2x128xf32>
    %23 = tpu.matmul %22, %5, %cst {dimension_numbers = #tpu.dot_dimension_numbers<[1], [0], [0], [1], [0, 0, 1, 1], [], []>} : vector<2x32xbf16>, vector<32x128xbf16>, vector<2x128xf32> -> vector<2x128xf32>
    %24 = arith.addf %21, %23 : vector<2x128xf32>
    %25 = math.tanh %24 : vector<2x128xf32>
    %26 = arith.negf %24 : vector<2x128xf32>
    %27 = math.exp %26 : vector<2x128xf32>
    %cst_13 = arith.constant 1.000000e+00 : f32
    %28 = vector.broadcast %cst_13 : f32 to vector<2x128xf32>
    %29 = arith.addf %28, %27 : vector<2x128xf32>
    %30 = arith.divf %28, %29 : vector<2x128xf32>
    %31 = arith.select %11, %25, %30 : vector<2x128xi1>, vector<2x128xf32>
    %32 = vector.extract_strided_slice %31 {offsets = [0, 0], sizes = [2, 32], strides = [1, 1]} : vector<2x128xf32> to vector<2x32xf32>
    %33 = vector.extract_strided_slice %31 {offsets = [0, 32], sizes = [2, 32], strides = [1, 1]} : vector<2x128xf32> to vector<2x32xf32>
    %34 = vector.extract_strided_slice %31 {offsets = [0, 64], sizes = [2, 32], strides = [1, 1]} : vector<2x128xf32> to vector<2x32xf32>
    %35 = vector.extract_strided_slice %31 {offsets = [0, 96], sizes = [2, 32], strides = [1, 1]} : vector<2x128xf32> to vector<2x32xf32>
    %36 = arith.mulf %33, %13 : vector<2x32xf32>
    %37 = arith.mulf %32, %34 : vector<2x32xf32>
    %38 = arith.addf %36, %37 : vector<2x32xf32>
    %39 = math.tanh %38 : vector<2x32xf32>
    %40 = arith.mulf %35, %39 : vector<2x32xf32>
    %c1_i32 = arith.constant 1 : i32
    %41 = arith.index_cast %c1_i32 : i32 to index
    %c0_14 = arith.constant 0 : index
    %c0_15 = arith.constant 0 : index
    %42 = vector.load %arg2[%41, %c0_14, %c0_15] : memref<8x2x1xf32, #tpu.memory_space<vmem>>, vector<1x2x1xf32>
    %43 = vector.shape_cast %42 : vector<1x2x1xf32> to vector<2x1xf32>
    %44 = vector.broadcast %43 : vector<2x1xf32> to vector<2x128xf32>
    %45 = vector.broadcast %3 : vector<1x128xf32> to vector<2x128xf32>
    %46 = arith.mulf %44, %45 : vector<2x128xf32>
    %47 = vector.broadcast %4 : vector<1x128xf32> to vector<2x128xf32>
    %48 = arith.addf %46, %47 : vector<2x128xf32>
    %49 = arith.truncf %40 : vector<2x32xf32> to vector<2x32xbf16>
    %cst_16 = arith.constant dense<0.000000e+00> : vector<2x128xf32>
    %50 = tpu.matmul %49, %5, %cst_16 {dimension_numbers = #tpu.dot_dimension_numbers<[1], [0], [0], [1], [0, 0, 1, 1], [], []>} : vector<2x32xbf16>, vector<32x128xbf16>, vector<2x128xf32> -> vector<2x128xf32>
    %51 = arith.addf %48, %50 : vector<2x128xf32>
    %52 = math.tanh %51 : vector<2x128xf32>
    %53 = arith.negf %51 : vector<2x128xf32>
    %54 = math.exp %53 : vector<2x128xf32>
    %cst_17 = arith.constant 1.000000e+00 : f32
    %55 = vector.broadcast %cst_17 : f32 to vector<2x128xf32>
    %56 = arith.addf %55, %54 : vector<2x128xf32>
    %57 = arith.divf %55, %56 : vector<2x128xf32>
    %58 = arith.select %11, %52, %57 : vector<2x128xi1>, vector<2x128xf32>
    %59 = vector.extract_strided_slice %58 {offsets = [0, 0], sizes = [2, 32], strides = [1, 1]} : vector<2x128xf32> to vector<2x32xf32>
    %60 = vector.extract_strided_slice %58 {offsets = [0, 32], sizes = [2, 32], strides = [1, 1]} : vector<2x128xf32> to vector<2x32xf32>
    %61 = vector.extract_strided_slice %58 {offsets = [0, 64], sizes = [2, 32], strides = [1, 1]} : vector<2x128xf32> to vector<2x32xf32>
    %62 = vector.extract_strided_slice %58 {offsets = [0, 96], sizes = [2, 32], strides = [1, 1]} : vector<2x128xf32> to vector<2x32xf32>
    %63 = arith.mulf %60, %38 : vector<2x32xf32>
    %64 = arith.mulf %59, %61 : vector<2x32xf32>
    %65 = arith.addf %63, %64 : vector<2x32xf32>
    %66 = math.tanh %65 : vector<2x32xf32>
    %67 = arith.mulf %62, %66 : vector<2x32xf32>
    %c2_i32 = arith.constant 2 : i32
    %68 = arith.index_cast %c2_i32 : i32 to index
    %c0_18 = arith.constant 0 : index
    %c0_19 = arith.constant 0 : index
    %69 = vector.load %arg2[%68, %c0_18, %c0_19] : memref<8x2x1xf32, #tpu.memory_space<vmem>>, vector<1x2x1xf32>
    %70 = vector.shape_cast %69 : vector<1x2x1xf32> to vector<2x1xf32>
    %71 = vector.broadcast %70 : vector<2x1xf32> to vector<2x128xf32>
    %72 = vector.broadcast %3 : vector<1x128xf32> to vector<2x128xf32>
    %73 = arith.mulf %71, %72 : vector<2x128xf32>
    %74 = vector.broadcast %4 : vector<1x128xf32> to vector<2x128xf32>
    %75 = arith.addf %73, %74 : vector<2x128xf32>
    %76 = arith.truncf %67 : vector<2x32xf32> to vector<2x32xbf16>
    %cst_20 = arith.constant dense<0.000000e+00> : vector<2x128xf32>
    %77 = tpu.matmul %76, %5, %cst_20 {dimension_numbers = #tpu.dot_dimension_numbers<[1], [0], [0], [1], [0, 0, 1, 1], [], []>} : vector<2x32xbf16>, vector<32x128xbf16>, vector<2x128xf32> -> vector<2x128xf32>
    %78 = arith.addf %75, %77 : vector<2x128xf32>
    %79 = math.tanh %78 : vector<2x128xf32>
    %80 = arith.negf %78 : vector<2x128xf32>
    %81 = math.exp %80 : vector<2x128xf32>
    %cst_21 = arith.constant 1.000000e+00 : f32
    %82 = vector.broadcast %cst_21 : f32 to vector<2x128xf32>
    %83 = arith.addf %82, %81 : vector<2x128xf32>
    %84 = arith.divf %82, %83 : vector<2x128xf32>
    %85 = arith.select %11, %79, %84 : vector<2x128xi1>, vector<2x128xf32>
    %86 = vector.extract_strided_slice %85 {offsets = [0, 0], sizes = [2, 32], strides = [1, 1]} : vector<2x128xf32> to vector<2x32xf32>
    %87 = vector.extract_strided_slice %85 {offsets = [0, 32], sizes = [2, 32], strides = [1, 1]} : vector<2x128xf32> to vector<2x32xf32>
    %88 = vector.extract_strided_slice %85 {offsets = [0, 64], sizes = [2, 32], strides = [1, 1]} : vector<2x128xf32> to vector<2x32xf32>
    %89 = vector.extract_strided_slice %85 {offsets = [0, 96], sizes = [2, 32], strides = [1, 1]} : vector<2x128xf32> to vector<2x32xf32>
    %90 = arith.mulf %87, %65 : vector<2x32xf32>
    %91 = arith.mulf %86, %88 : vector<2x32xf32>
    %92 = arith.addf %90, %91 : vector<2x32xf32>
    %93 = math.tanh %92 : vector<2x32xf32>
    %94 = arith.mulf %89, %93 : vector<2x32xf32>
    %c3_i32 = arith.constant 3 : i32
    %95 = arith.index_cast %c3_i32 : i32 to index
    %c0_22 = arith.constant 0 : index
    %c0_23 = arith.constant 0 : index
    %96 = vector.load %arg2[%95, %c0_22, %c0_23] : memref<8x2x1xf32, #tpu.memory_space<vmem>>, vector<1x2x1xf32>
    %97 = vector.shape_cast %96 : vector<1x2x1xf32> to vector<2x1xf32>
    %98 = vector.broadcast %97 : vector<2x1xf32> to vector<2x128xf32>
    %99 = vector.broadcast %3 : vector<1x128xf32> to vector<2x128xf32>
    %100 = arith.mulf %98, %99 : vector<2x128xf32>
    %101 = vector.broadcast %4 : vector<1x128xf32> to vector<2x128xf32>
    %102 = arith.addf %100, %101 : vector<2x128xf32>
    %103 = arith.truncf %94 : vector<2x32xf32> to vector<2x32xbf16>
    %cst_24 = arith.constant dense<0.000000e+00> : vector<2x128xf32>
    %104 = tpu.matmul %103, %5, %cst_24 {dimension_numbers = #tpu.dot_dimension_numbers<[1], [0], [0], [1], [0, 0, 1, 1], [], []>} : vector<2x32xbf16>, vector<32x128xbf16>, vector<2x128xf32> -> vector<2x128xf32>
    %105 = arith.addf %102, %104 : vector<2x128xf32>
    %106 = math.tanh %105 : vector<2x128xf32>
    %107 = arith.negf %105 : vector<2x128xf32>
    %108 = math.exp %107 : vector<2x128xf32>
    %cst_25 = arith.constant 1.000000e+00 : f32
    %109 = vector.broadcast %cst_25 : f32 to vector<2x128xf32>
    %110 = arith.addf %109, %108 : vector<2x128xf32>
    %111 = arith.divf %109, %110 : vector<2x128xf32>
    %112 = arith.select %11, %106, %111 : vector<2x128xi1>, vector<2x128xf32>
    %113 = vector.extract_strided_slice %112 {offsets = [0, 0], sizes = [2, 32], strides = [1, 1]} : vector<2x128xf32> to vector<2x32xf32>
    %114 = vector.extract_strided_slice %112 {offsets = [0, 32], sizes = [2, 32], strides = [1, 1]} : vector<2x128xf32> to vector<2x32xf32>
    %115 = vector.extract_strided_slice %112 {offsets = [0, 64], sizes = [2, 32], strides = [1, 1]} : vector<2x128xf32> to vector<2x32xf32>
    %116 = vector.extract_strided_slice %112 {offsets = [0, 96], sizes = [2, 32], strides = [1, 1]} : vector<2x128xf32> to vector<2x32xf32>
    %117 = arith.mulf %114, %92 : vector<2x32xf32>
    %118 = arith.mulf %113, %115 : vector<2x32xf32>
    %119 = arith.addf %117, %118 : vector<2x32xf32>
    %120 = math.tanh %119 : vector<2x32xf32>
    %121 = arith.mulf %116, %120 : vector<2x32xf32>
    %c4_i32 = arith.constant 4 : i32
    %122 = arith.index_cast %c4_i32 : i32 to index
    %c0_26 = arith.constant 0 : index
    %c0_27 = arith.constant 0 : index
    %123 = vector.load %arg2[%122, %c0_26, %c0_27] : memref<8x2x1xf32, #tpu.memory_space<vmem>>, vector<1x2x1xf32>
    %124 = vector.shape_cast %123 : vector<1x2x1xf32> to vector<2x1xf32>
    %125 = vector.broadcast %124 : vector<2x1xf32> to vector<2x128xf32>
    %126 = vector.broadcast %3 : vector<1x128xf32> to vector<2x128xf32>
    %127 = arith.mulf %125, %126 : vector<2x128xf32>
    %128 = vector.broadcast %4 : vector<1x128xf32> to vector<2x128xf32>
    %129 = arith.addf %127, %128 : vector<2x128xf32>
    %130 = arith.truncf %121 : vector<2x32xf32> to vector<2x32xbf16>
    %cst_28 = arith.constant dense<0.000000e+00> : vector<2x128xf32>
    %131 = tpu.matmul %130, %5, %cst_28 {dimension_numbers = #tpu.dot_dimension_numbers<[1], [0], [0], [1], [0, 0, 1, 1], [], []>} : vector<2x32xbf16>, vector<32x128xbf16>, vector<2x128xf32> -> vector<2x128xf32>
    %132 = arith.addf %129, %131 : vector<2x128xf32>
    %133 = math.tanh %132 : vector<2x128xf32>
    %134 = arith.negf %132 : vector<2x128xf32>
    %135 = math.exp %134 : vector<2x128xf32>
    %cst_29 = arith.constant 1.000000e+00 : f32
    %136 = vector.broadcast %cst_29 : f32 to vector<2x128xf32>
    %137 = arith.addf %136, %135 : vector<2x128xf32>
    %138 = arith.divf %136, %137 : vector<2x128xf32>
    %139 = arith.select %11, %133, %138 : vector<2x128xi1>, vector<2x128xf32>
    %140 = vector.extract_strided_slice %139 {offsets = [0, 0], sizes = [2, 32], strides = [1, 1]} : vector<2x128xf32> to vector<2x32xf32>
    %141 = vector.extract_strided_slice %139 {offsets = [0, 32], sizes = [2, 32], strides = [1, 1]} : vector<2x128xf32> to vector<2x32xf32>
    %142 = vector.extract_strided_slice %139 {offsets = [0, 64], sizes = [2, 32], strides = [1, 1]} : vector<2x128xf32> to vector<2x32xf32>
    %143 = vector.extract_strided_slice %139 {offsets = [0, 96], sizes = [2, 32], strides = [1, 1]} : vector<2x128xf32> to vector<2x32xf32>
    %144 = arith.mulf %141, %119 : vector<2x32xf32>
    %145 = arith.mulf %140, %142 : vector<2x32xf32>
    %146 = arith.addf %144, %145 : vector<2x32xf32>
    %147 = math.tanh %146 : vector<2x32xf32>
    %148 = arith.mulf %143, %147 : vector<2x32xf32>
    %c5_i32 = arith.constant 5 : i32
    %149 = arith.index_cast %c5_i32 : i32 to index
    %c0_30 = arith.constant 0 : index
    %c0_31 = arith.constant 0 : index
    %150 = vector.load %arg2[%149, %c0_30, %c0_31] : memref<8x2x1xf32, #tpu.memory_space<vmem>>, vector<1x2x1xf32>
    %151 = vector.shape_cast %150 : vector<1x2x1xf32> to vector<2x1xf32>
    %152 = vector.broadcast %151 : vector<2x1xf32> to vector<2x128xf32>
    %153 = vector.broadcast %3 : vector<1x128xf32> to vector<2x128xf32>
    %154 = arith.mulf %152, %153 : vector<2x128xf32>
    %155 = vector.broadcast %4 : vector<1x128xf32> to vector<2x128xf32>
    %156 = arith.addf %154, %155 : vector<2x128xf32>
    %157 = arith.truncf %148 : vector<2x32xf32> to vector<2x32xbf16>
    %cst_32 = arith.constant dense<0.000000e+00> : vector<2x128xf32>
    %158 = tpu.matmul %157, %5, %cst_32 {dimension_numbers = #tpu.dot_dimension_numbers<[1], [0], [0], [1], [0, 0, 1, 1], [], []>} : vector<2x32xbf16>, vector<32x128xbf16>, vector<2x128xf32> -> vector<2x128xf32>
    %159 = arith.addf %156, %158 : vector<2x128xf32>
    %160 = math.tanh %159 : vector<2x128xf32>
    %161 = arith.negf %159 : vector<2x128xf32>
    %162 = math.exp %161 : vector<2x128xf32>
    %cst_33 = arith.constant 1.000000e+00 : f32
    %163 = vector.broadcast %cst_33 : f32 to vector<2x128xf32>
    %164 = arith.addf %163, %162 : vector<2x128xf32>
    %165 = arith.divf %163, %164 : vector<2x128xf32>
    %166 = arith.select %11, %160, %165 : vector<2x128xi1>, vector<2x128xf32>
    %167 = vector.extract_strided_slice %166 {offsets = [0, 0], sizes = [2, 32], strides = [1, 1]} : vector<2x128xf32> to vector<2x32xf32>
    %168 = vector.extract_strided_slice %166 {offsets = [0, 32], sizes = [2, 32], strides = [1, 1]} : vector<2x128xf32> to vector<2x32xf32>
    %169 = vector.extract_strided_slice %166 {offsets = [0, 64], sizes = [2, 32], strides = [1, 1]} : vector<2x128xf32> to vector<2x32xf32>
    %170 = vector.extract_strided_slice %166 {offsets = [0, 96], sizes = [2, 32], strides = [1, 1]} : vector<2x128xf32> to vector<2x32xf32>
    %171 = arith.mulf %168, %146 : vector<2x32xf32>
    %172 = arith.mulf %167, %169 : vector<2x32xf32>
    %173 = arith.addf %171, %172 : vector<2x32xf32>
    %174 = math.tanh %173 : vector<2x32xf32>
    %175 = arith.mulf %170, %174 : vector<2x32xf32>
    %c6_i32 = arith.constant 6 : i32
    %176 = arith.index_cast %c6_i32 : i32 to index
    %c0_34 = arith.constant 0 : index
    %c0_35 = arith.constant 0 : index
    %177 = vector.load %arg2[%176, %c0_34, %c0_35] : memref<8x2x1xf32, #tpu.memory_space<vmem>>, vector<1x2x1xf32>
    %178 = vector.shape_cast %177 : vector<1x2x1xf32> to vector<2x1xf32>
    %179 = vector.broadcast %178 : vector<2x1xf32> to vector<2x128xf32>
    %180 = vector.broadcast %3 : vector<1x128xf32> to vector<2x128xf32>
    %181 = arith.mulf %179, %180 : vector<2x128xf32>
    %182 = vector.broadcast %4 : vector<1x128xf32> to vector<2x128xf32>
    %183 = arith.addf %181, %182 : vector<2x128xf32>
    %184 = arith.truncf %175 : vector<2x32xf32> to vector<2x32xbf16>
    %cst_36 = arith.constant dense<0.000000e+00> : vector<2x128xf32>
    %185 = tpu.matmul %184, %5, %cst_36 {dimension_numbers = #tpu.dot_dimension_numbers<[1], [0], [0], [1], [0, 0, 1, 1], [], []>} : vector<2x32xbf16>, vector<32x128xbf16>, vector<2x128xf32> -> vector<2x128xf32>
    %186 = arith.addf %183, %185 : vector<2x128xf32>
    %187 = math.tanh %186 : vector<2x128xf32>
    %188 = arith.negf %186 : vector<2x128xf32>
    %189 = math.exp %188 : vector<2x128xf32>
    %cst_37 = arith.constant 1.000000e+00 : f32
    %190 = vector.broadcast %cst_37 : f32 to vector<2x128xf32>
    %191 = arith.addf %190, %189 : vector<2x128xf32>
    %192 = arith.divf %190, %191 : vector<2x128xf32>
    %193 = arith.select %11, %187, %192 : vector<2x128xi1>, vector<2x128xf32>
    %194 = vector.extract_strided_slice %193 {offsets = [0, 0], sizes = [2, 32], strides = [1, 1]} : vector<2x128xf32> to vector<2x32xf32>
    %195 = vector.extract_strided_slice %193 {offsets = [0, 32], sizes = [2, 32], strides = [1, 1]} : vector<2x128xf32> to vector<2x32xf32>
    %196 = vector.extract_strided_slice %193 {offsets = [0, 64], sizes = [2, 32], strides = [1, 1]} : vector<2x128xf32> to vector<2x32xf32>
    %197 = vector.extract_strided_slice %193 {offsets = [0, 96], sizes = [2, 32], strides = [1, 1]} : vector<2x128xf32> to vector<2x32xf32>
    %198 = arith.mulf %195, %173 : vector<2x32xf32>
    %199 = arith.mulf %194, %196 : vector<2x32xf32>
    %200 = arith.addf %198, %199 : vector<2x32xf32>
    %201 = math.tanh %200 : vector<2x32xf32>
    %202 = arith.mulf %197, %201 : vector<2x32xf32>
    %c7_i32 = arith.constant 7 : i32
    %203 = arith.index_cast %c7_i32 : i32 to index
    %c0_38 = arith.constant 0 : index
    %c0_39 = arith.constant 0 : index
    %204 = vector.load %arg2[%203, %c0_38, %c0_39] : memref<8x2x1xf32, #tpu.memory_space<vmem>>, vector<1x2x1xf32>
    %205 = vector.shape_cast %204 : vector<1x2x1xf32> to vector<2x1xf32>
    %206 = vector.broadcast %205 : vector<2x1xf32> to vector<2x128xf32>
    %207 = vector.broadcast %3 : vector<1x128xf32> to vector<2x128xf32>
    %208 = arith.mulf %206, %207 : vector<2x128xf32>
    %209 = vector.broadcast %4 : vector<1x128xf32> to vector<2x128xf32>
    %210 = arith.addf %208, %209 : vector<2x128xf32>
    %211 = arith.truncf %202 : vector<2x32xf32> to vector<2x32xbf16>
    %cst_40 = arith.constant dense<0.000000e+00> : vector<2x128xf32>
    %212 = tpu.matmul %211, %5, %cst_40 {dimension_numbers = #tpu.dot_dimension_numbers<[1], [0], [0], [1], [0, 0, 1, 1], [], []>} : vector<2x32xbf16>, vector<32x128xbf16>, vector<2x128xf32> -> vector<2x128xf32>
    %213 = arith.addf %210, %212 : vector<2x128xf32>
    %214 = math.tanh %213 : vector<2x128xf32>
    %215 = arith.negf %213 : vector<2x128xf32>
    %216 = math.exp %215 : vector<2x128xf32>
    %cst_41 = arith.constant 1.000000e+00 : f32
    %217 = vector.broadcast %cst_41 : f32 to vector<2x128xf32>
    %218 = arith.addf %217, %216 : vector<2x128xf32>
    %219 = arith.divf %217, %218 : vector<2x128xf32>
    %220 = arith.select %11, %214, %219 : vector<2x128xi1>, vector<2x128xf32>
    %221 = vector.extract_strided_slice %220 {offsets = [0, 0], sizes = [2, 32], strides = [1, 1]} : vector<2x128xf32> to vector<2x32xf32>
    %222 = vector.extract_strided_slice %220 {offsets = [0, 32], sizes = [2, 32], strides = [1, 1]} : vector<2x128xf32> to vector<2x32xf32>
    %223 = vector.extract_strided_slice %220 {offsets = [0, 64], sizes = [2, 32], strides = [1, 1]} : vector<2x128xf32> to vector<2x32xf32>
    %224 = vector.extract_strided_slice %220 {offsets = [0, 96], sizes = [2, 32], strides = [1, 1]} : vector<2x128xf32> to vector<2x32xf32>
    %225 = arith.mulf %222, %200 : vector<2x32xf32>
    %226 = arith.mulf %221, %223 : vector<2x32xf32>
    %227 = arith.addf %225, %226 : vector<2x32xf32>
    %228 = math.tanh %227 : vector<2x32xf32>
    %229 = arith.mulf %224, %228 : vector<2x32xf32>
    %c8_i32 = arith.constant 8 : i32
    %c0_42 = arith.constant 0 : index
    %c0_43 = arith.constant 0 : index
    %230 = vector.load %arg9[%c0_42, %c0_43] : memref<2x32xf32, #tpu.memory_space<vmem>>, vector<2x32xf32>
    tpu.vector_store %arg9[%c0_42, %c0_43], %229 {strides = array<i32>} : memref<2x32xf32, #tpu.memory_space<vmem>>, vector<2x32xf32>,
    %c0_44 = arith.constant 0 : index
    %c0_45 = arith.constant 0 : index
    %231 = vector.load %arg10[%c0_44, %c0_45] : memref<2x32xf32, #tpu.memory_space<vmem>>, vector<2x32xf32>
    tpu.vector_store %arg10[%c0_44, %c0_45], %227 {strides = array<i32>} : memref<2x32xf32, #tpu.memory_space<vmem>>, vector<2x32xf32>,
    %c0_i32_46 = arith.constant 0 : i32
    %232 = arith.cmpi eq, %arg1, %c0_i32_46 : i32
    %233 = arith.extui %232 : i1 to i32
    %c0_i32_47 = arith.constant 0 : i32
    %234 = arith.cmpi ne, %233, %c0_i32_47 : i32
    scf.if %234 {
      %c0_48 = arith.constant 0 : index
      %c0_49 = arith.constant 0 : index
      %235 = vector.load %arg9[%c0_48, %c0_49] : memref<2x32xf32, #tpu.memory_space<vmem>>, vector<2x32xf32>
      %c0_50 = arith.constant 0 : index
      %c0_51 = arith.constant 0 : index
      %236 = vector.load %arg6[%c0_50, %c0_51] : memref<1x32xf32, #tpu.memory_space<vmem>>, vector<1x32xf32>
      %237 = vector.broadcast %236 : vector<1x32xf32> to vector<2x32xf32>
      %238 = arith.mulf %235, %237 : vector<2x32xf32>
      %cst_52 = arith.constant dense<0.000000e+00> : vector<2xf32>
      %239 = vector.multi_reduction <add>, %238, %cst_52 [1] : vector<2x32xf32> to vector<2xf32>
      %240 = vector.shape_cast %239 : vector<2xf32> to vector<2x1xf32>
      %c0_53 = arith.constant 0 : index
      %c0_54 = arith.constant 0 : index
      %241 = vector.load %arg7[%c0_53, %c0_54] : memref<1x1xf32, #tpu.memory_space<vmem>>, vector<1x1xf32>
      %242 = vector.broadcast %241 : vector<1x1xf32> to vector<2x1xf32>
      %243 = arith.addf %240, %242 : vector<2x1xf32>
      %c0_55 = arith.constant 0 : index
      %c0_56 = arith.constant 0 : index
      %244 = vector.load %arg8[%c0_55, %c0_56] : memref<2x1xf32, #tpu.memory_space<vmem>>, vector<2x1xf32>
      tpu.vector_store %arg8[%c0_55, %c0_56], %243 {strides = array<i32>} : memref<2x1xf32, #tpu.memory_space<vmem>>, vector<2x1xf32>,
    } else {
    }
    return
  }
  func.func @transform_0(%arg0: i32, %arg1: i32) -> (i32, i32, i32) {
    %c0_i32 = arith.constant 0 : i32
    %c0_i32_0 = arith.constant 0 : i32
    return %arg1, %arg0, %c0_i32 : i32, i32, i32
  }
  func.func @transform_1(%arg0: i32, %arg1: i32) -> (i32, i32) {
    %c0_i32 = arith.constant 0 : i32
    %c0_i32_0 = arith.constant 0 : i32
    %c0_i32_1 = arith.constant 0 : i32
    return %c0_i32, %c0_i32_0 : i32, i32
  }
  func.func @transform_2(%arg0: i32, %arg1: i32) -> (i32, i32) {
    %c0_i32 = arith.constant 0 : i32
    %c0_i32_0 = arith.constant 0 : i32
    %c0_i32_1 = arith.constant 0 : i32
    return %c0_i32, %c0_i32_0 : i32, i32
  }
  func.func @transform_3(%arg0: i32, %arg1: i32) -> (i32, i32) {
    %c0_i32 = arith.constant 0 : i32
    %c0_i32_0 = arith.constant 0 : i32
    %c0_i32_1 = arith.constant 0 : i32
    return %c0_i32, %c0_i32_0 : i32, i32
  }
  func.func @transform_4(%arg0: i32, %arg1: i32) -> (i32, i32) {
    %c0_i32 = arith.constant 0 : i32
    %c0_i32_0 = arith.constant 0 : i32
    %c0_i32_1 = arith.constant 0 : i32
    return %c0_i32, %c0_i32_0 : i32, i32
  }
  func.func @transform_5(%arg0: i32, %arg1: i32) -> (i32, i32) {
    %c0_i32 = arith.constant 0 : i32
    %c0_i32_0 = arith.constant 0 : i32
    %c0_i32_1 = arith.constant 0 : i32
    return %c0_i32, %c0_i32_0 : i32, i32
  }
  func.func @transform_6(%arg0: i32, %arg1: i32) -> (i32, i32) {
    %c0_i32 = arith.constant 0 : i32
    %c0_i32_0 = arith.constant 0 : i32
    return %arg0, %c0_i32 : i32, i32
  }
}

</mosaic_0001>

<bundles_post_ra>
// kernel: tpu_custom_call.1
= control target key start
LH: loop header
LB: loop body
LE: loop exit
PB: predicated region body
PF: predicated region fallthrough
CT: control target
= control target key end

     0   :  { %vm30_vm0 = vcmask 254976   ;;  %v958_v0 = vmov 0.0   ;;  %vm959_vm1 = vmmov 0   ;;  %v960_v2 = vmov 0   ;;  %s963_s21 = smov 96   ;;  %s1184_s2 = inlined_call_operand.vmem [shape: bf16[32,128], index: 2, kind: input, shape index: {}]   ;;  %s1185_s0 = inlined_call_operand.vmem [shape: f32[8,2,1], index: 0, kind: input, shape index: {}]   ;;  %s1186_s1 = inlined_call_operand.vmem [shape: f32[1,128], index: 1, kind: input, shape index: {}]   ;;  %s1187_s3 = inlined_call_operand.vmem [shape: f32[1,128], index: 3, kind: input, shape index: {}]   ;;  %s1188_s5 = inlined_call_operand.<no memory space> [shape: f32[1,1], index: 5, kind: input, shape index: {}]   ;;  %s1189_s4 = inlined_call_operand.vmem [shape: f32[1,32], index: 4, kind: input, shape index: {}]   ;;  %s1190_s6 = inlined_call_operand.vmem [shape: f32[2,1], index: 6, kind: output, shape index: {}]  }
   0x1   :  { %820 = vmatprep.subr.bf16.mxu0 %v958_v0  ;;  %v1003_v1 = vld [vmem:[%s1184_s2 + $0x8] sm:$0xff]   ;;  %824 = vmatprep.mubr.msk.bf16.mxu0 %vm959_vm1, %v958_v0  ;;  %31 = vst.msk [vmem:[#allocation2] sm:$0x3] %vm30_vm0, %v958_v0  ;;  %32 = vst.msk [vmem:[#allocation3] sm:$0x3] %vm30_vm0, %v958_v0  ;;  %v1016_v3 = vld [vmem:[%s1184_s2] sm:$0xff]   ;;  %v39_v21 = vlaneseq  ;;  %v11_v23 = vstv %s1188_s5 }
   0x2   :  { %890 = vset.pattern.permute.xlu0 %v960_v2  ;;  %828 = vmatprep.subr.bf16.mxu1 %v958_v0  ;;  %v46_v4 = vld [vmem:[%s1185_s0] sm:$0x3]  ;;  %vm79_vm2 = vcmask 261120   ;;  %s961_s2 = smov 32   ;;  %v773_v34 = vld [vmem:[%s1185_s0 + $0x2] sm:$0x3] }
   0x3   :  { %821 = vmatpush3.bf16.msra.mxu0 %v1003_v1  ;;  %829 = vmatpush3.bf16.msra.mxu1 %v1003_v1  ;;  %v1041_v8 = vld [vmem:[%s1186_s1] ss:$0 sm:$0xff]  ;;  %v40_v22 = vand.u32 127, %v39_v21  ;;  %s962_s1 = smov 64   ;;  %v776_v59 = vld [vmem:[%s1185_s0 + $0x4] sm:$0x3] }
   0x4   :  { %822 = vmatprep.subr.bf16.mxu0 %v958_v0  ;;  %49 = vperm.xlu0 %890, %v46_v4   ;;  %v1047_v11 = vld [vmem:[%s1187_s3] ss:$0 sm:$0xff]  ;;  %12 = vst [vmem:[#allocation4] sm:$0x1] %v11_v23  ;;  %vm761_vm6 = vcmask 1024  }
   0x5   :  { %830 = vmatprep.subr.bf16.mxu1 %v958_v0  ;;  %832 = vmatprep.mubr.msk.bf16.mxu1 %vm959_vm1, %v958_v0  ;;  %vm41_vm3 = vcmp.ge.s32.totalorder %v40_v22, 64  ;;  %vm42_vm4 = vcmp.lt.s32.totalorder %v40_v22, 96 }
   0x6   :  { %891 = vset.pattern.permute.xlu1 %v960_v2  ;;  %vm1050_vm5 = vmand %vm41_vm3, %vm42_vm4 }
   0x7   :  { %823 = vmatpush3.bf16.msra.mxu0 %v1016_v3  ;;  %831 = vmatpush3.bf16.msra.mxu1 %v1016_v3 }
   0x8   :  { %v44_v5 = vld [vmem:[#allocation2] sm:$0x3]  ;;  %v45_v6 = vld [vmem:[#allocation3] sm:$0x3]  ;;  %836 = vmatprep.subr.bf16.mxu0 %v958_v0  ;;  %844 = vmatprep.subr.bf16.mxu1 %v958_v0 }
   0x9   :  { %v66_v7 = vpack.c.bf16 %v44_v5, %v44_v5  ;;  %133 = vrot.lane.b32.xlu1 %v45_v6, %s961_s2 }
   0xb   :  { %825 = vmatmul.mubr.msk.bf16.vlgmr.msra.gmra.mxu0 %vm79_vm2, %v66_v7 }
   0xc   :  { %837 = vmatpush3.bf16.msra.mxu0 %v1003_v1  ;;  %840 = vmatprep.mubr.msk.bf16.mxu0 %vm959_vm1, %v958_v0 }
   0xd   :  { %838 = vmatprep.subr.bf16.mxu0 %v958_v0 }
  0x10   :  { %839 = vmatpush3.bf16.msra.mxu0 %v1016_v3 }
  0x11   :  { %852 = vmatprep.subr.bf16.mxu0 %v958_v0 }
  0x7b   :  { %v134_v29 = vpop.permute.xlu1 %133 }
  0x7f   :  { %v50_v9 = vpop.permute.xlu0 %49 }
  0x80   :  { %v58_v10 = vmul.f32 %v1041_v8, %v50_v9 }
  0x82   :  { %v65_v12 = vadd.f32 %v1047_v11, %v58_v10 }
  0xcb   :  { %v117_v13 = vpop.f32.mrf.mxu0 }
  0xcc   :  { %v123_v14 = vadd.f32 %v117_v13, %v65_v12 }
  0xcd   :  { %v826_v15 = vpop.f32.mrf.mxu0 }
  0xce   :  { %v772_v16 = vmul.f32 -1.442695, %v123_v14 }
  0xcf   :  { %v120_v17 = vpop.f32.mrf.mxu0 }
  0xd0   :  { %894 = vpow2.f32 %v772_v16 }
  0xd1   :  { %v827_v18 = vpop.f32.mrf.mxu0  ;;  %896 = vtanh.f32 %v123_v14 }
  0xdd   :  { %v895_v19 = vpop.eup %894 }
  0xde   :  { %v128_v20 = vadd.f32 1.0, %v895_v19  ;;  %v897_v24 = vpop.eup %896 }
  0xe0   :  { %898 = vrcp.f32 %v128_v20 }
  0xed   :  { %v899_v25 = vpop.eup %898 }
  0xee   :  { %v131_v26 = vsel %vm1050_vm5, %v897_v24, %v899_v25 }
  0xef   :  { %138 = vrot.lane.b32.xlu0 %v131_v26, %s962_s1  ;;  %v136_v30 = vmul.f32 %v134_v29, %v131_v26 }
 0x161   :  { %v139_v27 = vpop.permute.xlu0 %138 }
 0x162   :  { %v141_v28 = vmul.f32 %v139_v27, %v131_v26 }
 0x164   :  { %143 = vrot.lane.b32.xlu1 %v141_v28, %s961_s2 }
 0x1d6   :  { %v144_v31 = vpop.permute.xlu1 %143 }
 0x1d7   :  { %v146_v32 = vadd.f32 %v144_v31, %v136_v30 }
 0x1d9   :  { %900 = vtanh.f32 %v146_v32 }
 0x1e6   :  { %v901_v33 = vpop.eup %900 }
 0x1e7   :  { %149 = vrot.lane.b32.xlu0 %v901_v33, %s962_s1 }
 0x1eb   :  { %157 = vperm.xlu0 %890, %v773_v34  }
 0x259   :  { %v150_v35 = vpop.permute.xlu0 %149 }
 0x25a   :  { %v152_v36 = vmul.f32 %v150_v35, %v131_v26  ;;  %v779_v26 = vld [vmem:[%s1185_s0 + $0x6] sm:$0x3] }
 0x25c   :  { %v162_v37 = vpack.c.bf16 %v152_v36, %v152_v36 }
 0x25e   :  { %164 = vrot.lane.b32.xlu1 %v162_v37, %s961_s2 }
 0x266   :  { %v158_v39 = vpop.permute.xlu0 %157 }
 0x267   :  { %v160_v40 = vmul.f32 %v1041_v8, %v158_v39 }
 0x269   :  { %v161_v41 = vadd.f32 %v1047_v11, %v160_v40 }
 0x2d0   :  { %v165_v38 = vpop.permute.xlu1 %164 }
 0x2d1   :  { %833 = vmatmul.mubr.msk.bf16.vlgmr.msra.gmra.mxu1 %vm79_vm2, %v165_v38 }
 0x2d2   :  { %845 = vmatpush3.bf16.msra.mxu1 %v1003_v1  ;;  %848 = vmatprep.mubr.msk.bf16.mxu1 %vm959_vm1, %v958_v0 }
 0x2d3   :  { %846 = vmatprep.subr.bf16.mxu1 %v958_v0 }
 0x2d6   :  { %847 = vmatpush3.bf16.msra.mxu1 %v1016_v3 }
 0x2d7   :  { %860 = vmatprep.subr.bf16.mxu1 %v958_v0 }
 0x391   :  { %v203_v42 = vpop.f32.mrf.mxu1 }
 0x392   :  { %v209_v43 = vadd.f32 %v203_v42, %v161_v41 }
 0x393   :  { %v834_v44 = vpop.f32.mrf.mxu1 }
 0x394   :  { %v775_v45 = vmul.f32 -1.442695, %v209_v43 }
 0x395   :  { %v206_v46 = vpop.f32.mrf.mxu1 }
 0x396   :  { %902 = vpow2.f32 %v775_v45 }
 0x397   :  { %v835_v47 = vpop.f32.mrf.mxu1  ;;  %904 = vtanh.f32 %v209_v43 }
 0x3a3   :  { %v903_v48 = vpop.eup %902 }
 0x3a4   :  { %v214_v49 = vadd.f32 1.0, %v903_v48  ;;  %v905_v50 = vpop.eup %904 }
 0x3a6   :  { %906 = vrcp.f32 %v214_v49 }
 0x3b3   :  { %v907_v51 = vpop.eup %906 }
 0x3b4   :  { %v217_v52 = vsel %vm1050_vm5, %v905_v50, %v907_v51  ;;  %v782_v51 = vld [vmem:[%s1185_s0 + $0x8] sm:$0x3] }
 0x3b5   :  { %220 = vrot.lane.b32.xlu1 %v217_v52, %s962_s1  ;;  %v218_v55 = vmul.f32 %v217_v52, %v146_v32 }
 0x427   :  { %v221_v53 = vpop.permute.xlu1 %220 }
 0x428   :  { %v223_v54 = vmul.f32 %v221_v53, %v217_v52 }
 0x42a   :  { %225 = vrot.lane.b32.xlu0 %v223_v54, %s961_s2 }
 0x49c   :  { %v226_v56 = vpop.permute.xlu0 %225 }
 0x49d   :  { %v228_v57 = vadd.f32 %v226_v56, %v218_v55 }
 0x49f   :  { %908 = vtanh.f32 %v228_v57 }
 0x4ac   :  { %v909_v58 = vpop.eup %908 }
 0x4ad   :  { %231 = vrot.lane.b32.xlu1 %v909_v58, %s962_s1 }
 0x4b1   :  { %239 = vperm.xlu1 %891, %v776_v59  }
 0x51f   :  { %v232_v60 = vpop.permute.xlu1 %231 }
 0x520   :  { %v234_v61 = vmul.f32 %v232_v60, %v217_v52 }
 0x522   :  { %v244_v62 = vpack.c.bf16 %v234_v61, %v234_v61 }
 0x524   :  { %246 = vrot.lane.b32.xlu0 %v244_v62, %s961_s2 }
 0x52c   :  { %v240_v2 = vpop.permute.xlu1 %239 }
 0x52d   :  { %v242_v4 = vmul.f32 %v1041_v8, %v240_v2 }
 0x52f   :  { %v243_v5 = vadd.f32 %v1047_v11, %v242_v4 }
 0x596   :  { %v247_v63 = vpop.permute.xlu0 %246 }
 0x597   :  { %841 = vmatmul.mubr.msk.bf16.vlgmr.msra.gmra.mxu0 %vm79_vm2, %v247_v63 }
 0x598   :  { %853 = vmatpush3.bf16.msra.mxu0 %v1003_v1  ;;  %856 = vmatprep.mubr.msk.bf16.mxu0 %vm959_vm1, %v958_v0 }
 0x599   :  { %854 = vmatprep.subr.bf16.mxu0 %v958_v0 }
 0x59c   :  { %855 = vmatpush3.bf16.msra.mxu0 %v1016_v3 }
 0x59d   :  { %868 = vmatprep.subr.bf16.mxu0 %v958_v0 }
 0x657   :  { %v285_v6 = vpop.f32.mrf.mxu0 }
 0x658   :  { %v291_v7 = vadd.f32 %v285_v6, %v243_v5 }
 0x659   :  { %v842_v9 = vpop.f32.mrf.mxu0 }
 0x65a   :  { %v778_v10 = vmul.f32 -1.442695, %v291_v7 }
 0x65b   :  { %v288_v12 = vpop.f32.mrf.mxu0 }
 0x65c   :  { %910 = vpow2.f32 %v778_v10 }
 0x65d   :  { %v843_v13 = vpop.f32.mrf.mxu0  ;;  %912 = vtanh.f32 %v291_v7 }
 0x669   :  { %v911_v14 = vpop.eup %910 }
 0x66a   :  { %v296_v15 = vadd.f32 1.0, %v911_v14  ;;  %v913_v16 = vpop.eup %912 }
 0x66c   :  { %914 = vrcp.f32 %v296_v15 }
 0x679   :  { %v915_v17 = vpop.eup %914 }
 0x67a   :  { %v299_v18 = vsel %vm1050_vm5, %v913_v16, %v915_v17  ;;  %v785_v17 = vld [vmem:[%s1185_s0 + $0xa] sm:$0x3] }
 0x67b   :  { %302 = vrot.lane.b32.xlu0 %v299_v18, %s962_s1  ;;  %v300_v21 = vmul.f32 %v299_v18, %v228_v57 }
 0x6ed   :  { %v303_v19 = vpop.permute.xlu0 %302 }
 0x6ee   :  { %v305_v20 = vmul.f32 %v303_v19, %v299_v18 }
 0x6f0   :  { %307 = vrot.lane.b32.xlu1 %v305_v20, %s961_s2 }
 0x762   :  { %v308_v22 = vpop.permute.xlu1 %307 }
 0x763   :  { %v310_v24 = vadd.f32 %v308_v22, %v300_v21 }
 0x765   :  { %916 = vtanh.f32 %v310_v24 }
 0x772   :  { %v917_v25 = vpop.eup %916 }
 0x773   :  { %313 = vrot.lane.b32.xlu0 %v917_v25, %s962_s1 }
 0x777   :  { %321 = vperm.xlu0 %890, %v779_v26  }
 0x7e5   :  { %v314_v27 = vpop.permute.xlu0 %313 }
 0x7e6   :  { %v316_v28 = vmul.f32 %v314_v27, %v299_v18 }
 0x7e8   :  { %v326_v29 = vpack.c.bf16 %v316_v28, %v316_v28 }
 0x7ea   :  { %328 = vrot.lane.b32.xlu1 %v326_v29, %s961_s2 }
 0x7f2   :  { %v322_v31 = vpop.permute.xlu0 %321 }
 0x7f3   :  { %v324_v32 = vmul.f32 %v1041_v8, %v322_v31 }
 0x7f5   :  { %v325_v33 = vadd.f32 %v1047_v11, %v324_v32 }
 0x85c   :  { %v329_v30 = vpop.permute.xlu1 %328 }
 0x85d   :  { %849 = vmatmul.mubr.msk.bf16.vlgmr.msra.gmra.mxu1 %vm79_vm2, %v329_v30 }
 0x85e   :  { %861 = vmatpush3.bf16.msra.mxu1 %v1003_v1  ;;  %864 = vmatprep.mubr.msk.bf16.mxu1 %vm959_vm1, %v958_v0 }
 0x85f   :  { %862 = vmatprep.subr.bf16.mxu1 %v958_v0 }
 0x862   :  { %863 = vmatpush3.bf16.msra.mxu1 %v1016_v3 }
 0x863   :  { %876 = vmatprep.subr.bf16.mxu1 %v958_v0 }
 0x91d   :  { %v367_v34 = vpop.f32.mrf.mxu1 }
 0x91e   :  { %v373_v35 = vadd.f32 %v367_v34, %v325_v33 }
 0x91f   :  { %v850_v36 = vpop.f32.mrf.mxu1 }
 0x920   :  { %v781_v37 = vmul.f32 -1.442695, %v373_v35 }
 0x921   :  { %v370_v38 = vpop.f32.mrf.mxu1 }
 0x922   :  { %918 = vpow2.f32 %v781_v37 }
 0x923   :  { %v851_v39 = vpop.f32.mrf.mxu1  ;;  %920 = vtanh.f32 %v373_v35 }
 0x92f   :  { %v919_v40 = vpop.eup %918 }
 0x930   :  { %v378_v41 = vadd.f32 1.0, %v919_v40  ;;  %v921_v42 = vpop.eup %920  ;;  %v788_v40 = vld [vmem:[%s1185_s0 + $0xc] sm:$0x3] }
 0x932   :  { %922 = vrcp.f32 %v378_v41 }
 0x93f   :  { %v923_v43 = vpop.eup %922 }
 0x940   :  { %v381_v44 = vsel %vm1050_vm5, %v921_v42, %v923_v43 }
 0x941   :  { %384 = vrot.lane.b32.xlu1 %v381_v44, %s962_s1  ;;  %v382_v47 = vmul.f32 %v381_v44, %v310_v24 }
 0x9b3   :  { %v385_v45 = vpop.permute.xlu1 %384 }
 0x9b4   :  { %v387_v46 = vmul.f32 %v385_v45, %v381_v44 }
 0x9b6   :  { %389 = vrot.lane.b32.xlu0 %v387_v46, %s961_s2 }
 0xa28   :  { %v390_v48 = vpop.permute.xlu0 %389 }
 0xa29   :  { %v392_v49 = vadd.f32 %v390_v48, %v382_v47 }
 0xa2b   :  { %924 = vtanh.f32 %v392_v49 }
 0xa38   :  { %v925_v50 = vpop.eup %924 }
 0xa39   :  { %395 = vrot.lane.b32.xlu1 %v925_v50, %s962_s1 }
 0xa3d   :  { %403 = vperm.xlu1 %891, %v782_v51  }
 0xaab   :  { %v396_v52 = vpop.permute.xlu1 %395 }
 0xaac   :  { %v398_v53 = vmul.f32 %v396_v52, %v381_v44 }
 0xaae   :  { %v408_v54 = vpack.c.bf16 %v398_v53, %v398_v53 }
 0xab0   :  { %410 = vrot.lane.b32.xlu0 %v408_v54, %s961_s2 }
 0xab8   :  { %v404_v56 = vpop.permute.xlu1 %403 }
 0xab9   :  { %v406_v57 = vmul.f32 %v1041_v8, %v404_v56 }
 0xabb   :  { %v407_v58 = vadd.f32 %v1047_v11, %v406_v57 }
 0xb22   :  { %v411_v55 = vpop.permute.xlu0 %410 }
 0xb23   :  { %857 = vmatmul.mubr.msk.bf16.vlgmr.msra.gmra.mxu0 %vm79_vm2, %v411_v55 }
 0xb24   :  { %869 = vmatpush3.bf16.msra.mxu0 %v1003_v1  ;;  %872 = vmatprep.mubr.msk.bf16.mxu0 %vm959_vm1, %v958_v0 }
 0xb25   :  { %870 = vmatprep.subr.bf16.mxu0 %v958_v0 }
 0xb28   :  { %871 = vmatpush3.bf16.msra.mxu0 %v1016_v3 }
 0xbe3   :  { %v449_v59 = vpop.f32.mrf.mxu0 }
 0xbe4   :  { %v455_v60 = vadd.f32 %v449_v59, %v407_v58 }
 0xbe5   :  { %v858_v61 = vpop.f32.mrf.mxu0 }
 0xbe6   :  { %v784_v62 = vmul.f32 -1.442695, %v455_v60 }
 0xbe7   :  { %v452_v63 = vpop.f32.mrf.mxu0 }
 0xbe8   :  { %926 = vpow2.f32 %v784_v62 }
 0xbe9   :  { %v859_v2 = vpop.f32.mrf.mxu0  ;;  %928 = vtanh.f32 %v455_v60 }
 0xbf5   :  { %v927_v4 = vpop.eup %926 }
 0xbf6   :  { %v460_v5 = vadd.f32 1.0, %v927_v4  ;;  %v929_v6 = vpop.eup %928  ;;  %v791_v4 = vld [vmem:[%s1185_s0 + $0xe] sm:$0x3] }
 0xbf8   :  { %930 = vrcp.f32 %v460_v5 }
 0xc05   :  { %v931_v7 = vpop.eup %930 }
 0xc06   :  { %v463_v9 = vsel %vm1050_vm5, %v929_v6, %v931_v7 }
 0xc07   :  { %466 = vrot.lane.b32.xlu0 %v463_v9, %s962_s1  ;;  %v464_v13 = vmul.f32 %v463_v9, %v392_v49 }
 0xc79   :  { %v467_v10 = vpop.permute.xlu0 %466 }
 0xc7a   :  { %v469_v12 = vmul.f32 %v467_v10, %v463_v9 }
 0xc7c   :  { %471 = vrot.lane.b32.xlu1 %v469_v12, %s961_s2 }
 0xcee   :  { %v472_v14 = vpop.permute.xlu1 %471 }
 0xcef   :  { %v474_v15 = vadd.f32 %v472_v14, %v464_v13 }
 0xcf1   :  { %932 = vtanh.f32 %v474_v15 }
 0xcfe   :  { %v933_v16 = vpop.eup %932 }
 0xcff   :  { %477 = vrot.lane.b32.xlu0 %v933_v16, %s962_s1 }
 0xd03   :  { %485 = vperm.xlu0 %890, %v785_v17  }
 0xd71   :  { %v478_v18 = vpop.permute.xlu0 %477 }
 0xd72   :  { %v480_v19 = vmul.f32 %v478_v18, %v463_v9 }
 0xd74   :  { %v490_v20 = vpack.c.bf16 %v480_v19, %v480_v19 }
 0xd76   :  { %492 = vrot.lane.b32.xlu1 %v490_v20, %s961_s2 }
 0xd7e   :  { %v486_v22 = vpop.permute.xlu0 %485 }
 0xd7f   :  { %v488_v24 = vmul.f32 %v1041_v8, %v486_v22 }
 0xd81   :  { %v489_v25 = vadd.f32 %v1047_v11, %v488_v24 }
 0xde8   :  { %v493_v21 = vpop.permute.xlu1 %492 }
 0xde9   :  { %865 = vmatmul.mubr.msk.bf16.vlgmr.msra.gmra.mxu1 %vm79_vm2, %v493_v21 }
 0xdea   :  { %877 = vmatpush3.bf16.msra.mxu1 %v1003_v1  ;;  %880 = vmatprep.mubr.msk.bf16.mxu1 %vm959_vm1, %v958_v0 }
 0xdeb   :  { %878 = vmatprep.subr.bf16.mxu1 %v958_v0 }
 0xdee   :  { %879 = vmatpush3.bf16.msra.mxu1 %v1016_v3 }
 0xea9   :  { %v531_v26 = vpop.f32.mrf.mxu1 }
 0xeaa   :  { %v537_v27 = vadd.f32 %v531_v26, %v489_v25 }
 0xeab   :  { %v866_v28 = vpop.f32.mrf.mxu1 }
 0xeac   :  { %v787_v29 = vmul.f32 -1.442695, %v537_v27 }
 0xead   :  { %v534_v30 = vpop.f32.mrf.mxu1 }
 0xeae   :  { %934 = vpow2.f32 %v787_v29 }
 0xeaf   :  { %v867_v31 = vpop.f32.mrf.mxu1  ;;  %936 = vtanh.f32 %v537_v27 }
 0xebb   :  { %v935_v1 = vpop.eup %934 }
 0xebc   :  { %v542_v32 = vadd.f32 1.0, %v935_v1  ;;  %v937_v33 = vpop.eup %936 }
 0xebe   :  { %938 = vrcp.f32 %v542_v32 }
 0xecb   :  { %v939_v0 = vpop.eup %938 }
 0xecc   :  { %v545_v3 = vsel %vm1050_vm5, %v937_v33, %v939_v0  ;;  %v794_v33 = vld [vmem:[%s1189_s4] ss:$0 sm:$0xff] }
 0xecd   :  { %548 = vrot.lane.b32.xlu1 %v545_v3, %s962_s1  ;;  %v546_v36 = vmul.f32 %v545_v3, %v474_v15 }
 0xf3f   :  { %v549_v34 = vpop.permute.xlu1 %548 }
 0xf40   :  { %v551_v35 = vmul.f32 %v549_v34, %v545_v3 }
 0xf42   :  { %553 = vrot.lane.b32.xlu0 %v551_v35, %s961_s2  ;;  %v795_v35 = vld [vmem:[#allocation4] ss:$0 sm:$0xff] }
 0xfb4   :  { %v554_v37 = vpop.permute.xlu0 %553 }
 0xfb5   :  { %v556_v38 = vadd.f32 %v554_v37, %v546_v36 }
 0xfb7   :  { %940 = vtanh.f32 %v556_v38 }
 0xfc4   :  { %v941_v39 = vpop.eup %940 }
 0xfc5   :  { %559 = vrot.lane.b32.xlu1 %v941_v39, %s962_s1 }
 0xfc9   :  { %567 = vperm.xlu1 %891, %v788_v40  }
0x1037   :  { %v560_v41 = vpop.permute.xlu1 %559 }
0x1038   :  { %v562_v42 = vmul.f32 %v560_v41, %v545_v3 }
0x103a   :  { %v572_v43 = vpack.c.bf16 %v562_v42, %v562_v42 }
0x103c   :  { %574 = vrot.lane.b32.xlu0 %v572_v43, %s961_s2 }
0x1044   :  { %v568_v45 = vpop.permute.xlu1 %567 }
0x1045   :  { %v570_v46 = vmul.f32 %v1041_v8, %v568_v45 }
0x1047   :  { %v571_v47 = vadd.f32 %v1047_v11, %v570_v46 }
0x10ae   :  { %v575_v44 = vpop.permute.xlu0 %574 }
0x10af   :  { %873 = vmatmul.mubr.msk.bf16.vlgmr.msra.gmra.mxu0 %vm79_vm2, %v575_v44 }
0x116f   :  { %v613_v48 = vpop.f32.mrf.mxu0 }
0x1170   :  { %v619_v49 = vadd.f32 %v613_v48, %v571_v47 }
0x1171   :  { %v874_v50 = vpop.f32.mrf.mxu0 }
0x1172   :  { %v790_v51 = vmul.f32 -1.442695, %v619_v49 }
0x1173   :  { %v616_v52 = vpop.f32.mrf.mxu0 }
0x1174   :  { %942 = vpow2.f32 %v790_v51 }
0x1175   :  { %v875_v53 = vpop.f32.mrf.mxu0  ;;  %944 = vtanh.f32 %v619_v49 }
0x1181   :  { %v943_v54 = vpop.eup %942 }
0x1182   :  { %v624_v55 = vadd.f32 1.0, %v943_v54  ;;  %v945_v56 = vpop.eup %944 }
0x1184   :  { %946 = vrcp.f32 %v624_v55 }
0x1191   :  { %v947_v57 = vpop.eup %946 }
0x1192   :  { %v627_v58 = vsel %vm1050_vm5, %v945_v56, %v947_v57 }
0x1193   :  { %630 = vrot.lane.b32.xlu0 %v627_v58, %s962_s1  ;;  %v628_v61 = vmul.f32 %v627_v58, %v556_v38 }
0x1205   :  { %v631_v59 = vpop.permute.xlu0 %630 }
0x1206   :  { %v633_v60 = vmul.f32 %v631_v59, %v627_v58 }
0x1208   :  { %635 = vrot.lane.b32.xlu1 %v633_v60, %s961_s2 }
0x127a   :  { %v636_v62 = vpop.permute.xlu1 %635 }
0x127b   :  { %v638_v63 = vadd.f32 %v636_v62, %v628_v61 }
0x127d   :  { %948 = vtanh.f32 %v638_v63 }
0x128a   :  { %v949_v2 = vpop.eup %948 }
0x128b   :  { %641 = vrot.lane.b32.xlu0 %v949_v2, %s962_s1 }
0x128f   :  { %649 = vperm.xlu0 %890, %v791_v4  }
0x12fd   :  { %v642_v5 = vpop.permute.xlu0 %641 }
0x12fe   :  { %v644_v6 = vmul.f32 %v642_v5, %v627_v58 }
0x1300   :  { %v654_v7 = vpack.c.bf16 %v644_v6, %v644_v6 }
0x1302   :  { %656 = vrot.lane.b32.xlu1 %v654_v7, %s961_s2 }
0x130a   :  { %v650_v10 = vpop.permute.xlu0 %649 }
0x130b   :  { %v652_v12 = vmul.f32 %v1041_v8, %v650_v10 }
0x130d   :  { %v653_v13 = vadd.f32 %v1047_v11, %v652_v12 }
0x1374   :  { %v657_v9 = vpop.permute.xlu1 %656 }
0x1375   :  { %881 = vmatmul.mubr.msk.bf16.vlgmr.msra.gmra.mxu1 %vm79_vm2, %v657_v9 }
0x1435   :  { %v695_v14 = vpop.f32.mrf.mxu1 }
0x1436   :  { %v701_v15 = vadd.f32 %v695_v14, %v653_v13 }
0x1437   :  { %v882_v16 = vpop.f32.mrf.mxu1 }
0x1438   :  { %v793_v17 = vmul.f32 -1.442695, %v701_v15 }
0x1439   :  { %v698_v18 = vpop.f32.mrf.mxu1 }
0x143a   :  { %950 = vpow2.f32 %v793_v17 }
0x143b   :  { %v883_v19 = vpop.f32.mrf.mxu1  ;;  %952 = vtanh.f32 %v701_v15 }
0x1447   :  { %v951_v20 = vpop.eup %950 }
0x1448   :  { %v706_v21 = vadd.f32 1.0, %v951_v20  ;;  %v953_v22 = vpop.eup %952 }
0x144a   :  { %954 = vrcp.f32 %v706_v21 }
0x1457   :  { %v955_v24 = vpop.eup %954 }
0x1458   :  { %v709_v25 = vsel %vm1050_vm5, %v953_v22, %v955_v24 }
0x1459   :  { %712 = vrot.lane.b32.xlu1 %v709_v25, %s962_s1  ;;  %v710_v26 = vmul.f32 %v709_v25, %v638_v63 }
0x14cb   :  { %v713_v8 = vpop.permute.xlu1 %712 }
0x14cc   :  { %v715_v11 = vmul.f32 %v713_v8, %v709_v25 }
0x14ce   :  { %717 = vrot.lane.b32.xlu0 %v715_v11, %s961_s2 }
0x1540   :  { %v718_v27 = vpop.permute.xlu0 %717 }
0x1541   :  { %v720_v28 = vadd.f32 %v718_v27, %v710_v26 }
0x1543   :  { %956 = vtanh.f32 %v720_v28 }
0x1550   :  { %v957_v29 = vpop.eup %956 }
0x1551   :  { %723 = vrot.lane.b32.xlu1 %v957_v29, %s962_s1 }
0x15c3   :  { %v724_v30 = vpop.permute.xlu1 %723 }
0x15c4   :  { %v726_v31 = vmul.f32 %v724_v30, %v709_v25 }
0x15c6   :  { %728 = vrot.lane.b32.xlu0 %v726_v31, %s961_s2 }
0x15ca   :  { %734 = vrot.lane.b32.xlu0 %v720_v28, %s963_s21 }
0x1638   :  { %v729_v1 = vpop.permute.xlu0 %728 }
0x1639   :  { %732 = vst.msk [vmem:[#allocation2] sm:$0x3] %vm30_vm0, %v729_v1 }
0x163c   :  { %v735_v32 = vpop.permute.xlu0 %734 }
0x163d   :  { %737 = vst.msk [vmem:[#allocation3] sm:$0x3] %vm30_vm0, %v735_v32 }
0x1640   :  { %v741_v0 = vld [vmem:[#allocation2] sm:$0x3] }
0x1641   :  { %v749_v3 = vmul.f32 %v794_v33, %v741_v0 }
0x1643   :  { %v750_v34 = vsel %vm30_vm0, %v749_v3, 0.0 }
0x1644   :  { %751 = vadd.xlane.f32.xlu1 %v750_v34 }
0x16cd   :  { %v752_v36 = vpop.xlane.xlu1 %751 }
0x16ce   :  { %v760_v37 = vadd.f32 %v795_v35, %v752_v36 }
0x16d0   :  { %762 = vst.msk [vmem:[%s1190_s6] sm:$0x3] %vm761_vm6, %v760_v37 }

</bundles_post_ra>
